<compile_context>
chip_gen: v6e
topology: v6e:2x2x1
jax: 0.10.0
libtpu: 0.0.40
codegen_flags: <defaults>
</compile_context>

<pallas_src>
import functools

import jax
import jax.numpy as jnp
from jax.experimental import pallas as pl
from jax.experimental.pallas import tpu as pltpu


def _round_up(x, m):
    return ((x + m - 1) // m) * m


def fully_connected_kernel(x_ref, w_ref, b_ref, feat_ref, logits_ref,
                           acc_ref, logit_acc_ref, *, inv_hw):
    c = pl.program_id(1)
    s = pl.program_id(2)
    n_c = pl.num_programs(1)
    n_s = pl.num_programs(2)

    @pl.when(s == 0)
    def _():
        acc_ref[...] = jnp.zeros_like(acc_ref)

    # Partial spatial reduction for this tile: keep the steady-state loop on
    # VALU vreg adds (fold the spatial tile into groups of 128 lanes); the
    # cross-lane (XLU) reduce is deferred to the final spatial step.
    x = x_ref[...].astype(jnp.float32)            # (TN, TC, TS), f32 accumulate
    tn, tc, ts = x.shape
    acc_ref[...] += x.reshape(tn, tc, ts // 128, 128).sum(axis=2)

    @pl.when(s == n_s - 1)
    def _():
        # Final 128-lane reduce + mean scaling -> pooled features (out_1 tile).
        pooled = acc_ref[...].sum(axis=2) * inv_hw            # (TN, TC) f32
        feat_ref[...] = pooled.astype(feat_ref.dtype)

        @pl.when(c == 0)
        def _():
            logit_acc_ref[...] = jnp.zeros_like(logit_acc_ref)

        # Partial fc_4 matmul for this channel tile: (TN,TC) @ (TC,Kp) on MXU.
        logit_acc_ref[...] += jnp.dot(pooled, w_ref[...],
                                      preferred_element_type=jnp.float32)

        @pl.when(c == n_c - 1)
        def _():
            logits_ref[...] = (logit_acc_ref[...] + b_ref[...]
                               ).astype(logits_ref.dtype)


def fully_connected_forward(x, w, b, *, tc_target=256, ts_target=512):
    """x: (N, C, H, W); w: (K, C) as stored by nn.Linear; b: (K,)."""
    N, C, H, W = x.shape
    K = w.shape[0]
    HW = H * W

    # ---- tile sizes + zero padding so every block divides evenly ----------
    TS = ts_target if HW >= ts_target else _round_up(HW, 128)
    HWp = _round_up(HW, TS)
    TC = C if C <= tc_target else tc_target
    Cp = _round_up(C, TC)
    Kp = _round_up(K, 128)                      # lane-dense logits store
    TN = N if (N <= 8 or (N % 8) != 0) else 8   # batch tile (megacore axis)

    x3 = x.reshape(N, C, HW)
    if HWp != HW or Cp != C:
        x3 = jnp.pad(x3, ((0, 0), (0, Cp - C), (0, HWp - HW)))
    # nn.Linear: logits = x @ W.T + b  -> pass W.T (padded) so the contraction
    # is a plain (TN,TC)@(TC,Kp) and the logits store is lane-dense.
    wt = jnp.zeros((Cp, Kp), w.dtype).at[:C, :K].set(w.T)
    b2 = jnp.zeros((1, Kp), b.dtype).at[0, :K].set(b)

    grid = (N // TN, Cp // TC, HWp // TS)
    kernel = functools.partial(fully_connected_kernel, inv_hw=1.0 / float(HW))

    out_shapes = (
        jax.ShapeDtypeStruct((N, Cp), x.dtype),   # out_1 (features), padded C
        jax.ShapeDtypeStruct((N, Kp), x.dtype),   # out_3 (logits), padded K
    )

    flops = 2 * N * C * K + N * C * HW
    bytes_accessed = 4 * (x3.size + wt.size + b2.size + N * Cp + N * Kp)

    feat_p, logits_p = pl.pallas_call(
        kernel,
        out_shape=out_shapes,
        grid_spec=pltpu.PrefetchScalarGridSpec(
            num_scalar_prefetch=0,
            grid=grid,
            in_specs=[
                pl.BlockSpec((TN, TC, TS), lambda n, c, s: (n, c, s)),
                pl.BlockSpec((TC, Kp), lambda n, c, s: (c, 0)),   # W.T tile
                pl.BlockSpec((1, Kp), lambda n, c, s: (0, 0)),    # bias resident
            ],
            out_specs=(
                pl.BlockSpec((TN, TC), lambda n, c, s: (n, c)),
                pl.BlockSpec((TN, Kp), lambda n, c, s: (n, 0)),
            ),
            scratch_shapes=[
                pltpu.VMEM((TN, TC, 128), jnp.float32),   # spatial-sum accum
                pltpu.VMEM((TN, Kp), jnp.float32),        # logits accum
            ],
        ),
        compiler_params=pltpu.CompilerParams(
            dimension_semantics=("parallel", "arbitrary", "arbitrary"),
            vmem_limit_bytes=32 * 1024 * 1024,
        ),
        cost_estimate=pl.CostEstimate(
            flops=flops, transcendentals=0, bytes_accessed=bytes_accessed),
    )(x3, wt, b2)

    return feat_p[:, :C], logits_p[:, :K]


if __name__ == "__main__":
    key = jax.random.PRNGKey(0)
    kx, kw, kb = jax.random.split(key, 3)

    # Small stand-in shapes (real KimiaNet: batch=16, num_ftrs=1024, classes=30).
    N, C, H, W = 2, 4, 16, 16
    num_classes = 8

    x = jax.random.normal(kx, (N, C, H, W), dtype=jnp.float32)
    # Deterministic synthetic nn.Linear(num_ftrs, num_classes) parameters.
    w = jax.random.normal(kw, (num_classes, C), dtype=jnp.float32) * 0.02
    b = jax.random.normal(kb, (num_classes,), dtype=jnp.float32) * 0.02

    out_1, out_3 = jax.block_until_ready(fully_connected_forward(x, w, b))

    # Pure-JAX reference for correctness.
    feat_ref = jnp.mean(x, axis=(2, 3))            # model(x) stand-in + flatten
    logits_ref = feat_ref @ w.T + b                # fc_4
    assert out_1.shape == (N, C) and out_3.shape == (N, num_classes)
    assert jnp.allclose(out_1, feat_ref, atol=1e-5, rtol=1e-5)
    assert jnp.allclose(out_3, logits_ref, atol=1e-5, rtol=1e-5)

    print("KERNEL_OK")
</pallas_src>

<mosaic_0001>
module attributes {stable_mosaic.version = 11 : i64} {
  func.func @fully_connected_kernel(%arg0: i32, %arg1: i32, %arg2: i32, %arg3: memref<2x4x256xf32, #tpu.memory_space<vmem>>, %arg4: memref<4x128xf32, #tpu.memory_space<vmem>>, %arg5: memref<1x128xf32, #tpu.memory_space<vmem>>, %arg6: memref<2x4xf32, #tpu.memory_space<vmem>>, %arg7: memref<2x128xf32, #tpu.memory_space<vmem>>, %arg8: memref<2x4x128xf32, #tpu.memory_space<vmem>>, %arg9: memref<2x128xf32, #tpu.memory_space<vmem>>) attributes {dimension_semantics = [#tpu.dimension_semantics<parallel>, #tpu.dimension_semantics<arbitrary>, #tpu.dimension_semantics<arbitrary>], iteration_bounds = array<i64: 1, 1, 1>, scalar_prefetch = 0 : i64, scratch_operands = 2 : i64, tpu.core_type = #tpu.core_type<tc>, window_params = [{transform_indices = @transform_0, window_bounds = array<i64: 2, 4, 256>}, {transform_indices = @transform_1, window_bounds = array<i64: 4, 128>}, {pipeline_mode = #tpu.pipeline_mode<synchronous>, transform_indices = @transform_2, window_bounds = array<i64: 1, 128>}, {transform_indices = @transform_3, window_bounds = array<i64: 2, 4>}, {transform_indices = @transform_4, window_bounds = array<i64: 2, 128>}]} {
    %c0_i32 = arith.constant 0 : i32
    %0 = arith.cmpi eq, %arg2, %c0_i32 : i32
    %1 = arith.extui %0 : i1 to i32
    %c0_i32_0 = arith.constant 0 : i32
    %2 = arith.cmpi ne, %1, %c0_i32_0 : i32
    scf.if %2 {
      %cst_11 = arith.constant 0.000000e+00 : f32
      %12 = vector.broadcast %cst_11 : f32 to vector<2x4x128xf32>
      %c0_12 = arith.constant 0 : index
      %c0_13 = arith.constant 0 : index
      %c0_14 = arith.constant 0 : index
      %13 = vector.load %arg8[%c0_12, %c0_13, %c0_14] : memref<2x4x128xf32, #tpu.memory_space<vmem>>, vector<2x4x128xf32>
      tpu.vector_store %arg8[%c0_12, %c0_13, %c0_14], %12 {strides = array<i32>} : memref<2x4x128xf32, #tpu.memory_space<vmem>>, vector<2x4x128xf32>,
    } else {
    }
    %c0 = arith.constant 0 : index
    %c0_1 = arith.constant 0 : index
    %c0_2 = arith.constant 0 : index
    %3 = vector.load %arg3[%c0, %c0_1, %c0_2] : memref<2x4x256xf32, #tpu.memory_space<vmem>>, vector<2x4x256xf32>
    %c0_3 = arith.constant 0 : index
    %c0_4 = arith.constant 0 : index
    %c0_5 = arith.constant 0 : index
    %4 = vector.load %arg8[%c0_3, %c0_4, %c0_5] : memref<2x4x128xf32, #tpu.memory_space<vmem>>, vector<2x4x128xf32>
    %5 = vector.shape_cast %3 : vector<2x4x256xf32> to vector<2x4x2x128xf32>
    %cst = arith.constant dense<0.000000e+00> : vector<2x4x128xf32>
    %6 = vector.multi_reduction <add>, %5, %cst [2] : vector<2x4x2x128xf32> to vector<2x4x128xf32>
    %7 = arith.addf %4, %6 : vector<2x4x128xf32>
    %c0_6 = arith.constant 0 : index
    %c0_7 = arith.constant 0 : index
    %c0_8 = arith.constant 0 : index
    %8 = vector.load %arg8[%c0_6, %c0_7, %c0_8] : memref<2x4x128xf32, #tpu.memory_space<vmem>>, vector<2x4x128xf32>
    tpu.vector_store %arg8[%c0_6, %c0_7, %c0_8], %7 {strides = array<i32>} : memref<2x4x128xf32, #tpu.memory_space<vmem>>, vector<2x4x128xf32>,
    %c0_i32_9 = arith.constant 0 : i32
    %9 = arith.cmpi eq, %arg2, %c0_i32_9 : i32
    %10 = arith.extui %9 : i1 to i32
    %c0_i32_10 = arith.constant 0 : i32
    %11 = arith.cmpi ne, %10, %c0_i32_10 : i32
    scf.if %11 {
      %c0_11 = arith.constant 0 : index
      %c0_12 = arith.constant 0 : index
      %c0_13 = arith.constant 0 : index
      %12 = vector.load %arg8[%c0_11, %c0_12, %c0_13] : memref<2x4x128xf32, #tpu.memory_space<vmem>>, vector<2x4x128xf32>
      %cst_14 = arith.constant dense<0.000000e+00> : vector<2x4xf32>
      %13 = vector.multi_reduction <add>, %12, %cst_14 [2] : vector<2x4x128xf32> to vector<2x4xf32>
      %cst_15 = arith.constant 3.906250e-03 : f32
      %14 = vector.broadcast %cst_15 : f32 to vector<2x4xf32>
      %15 = arith.mulf %13, %14 : vector<2x4xf32>
      %c0_16 = arith.constant 0 : index
      %c0_17 = arith.constant 0 : index
      %16 = vector.load %arg6[%c0_16, %c0_17] : memref<2x4xf32, #tpu.memory_space<vmem>>, vector<2x4xf32>
      tpu.vector_store %arg6[%c0_16, %c0_17], %15 {strides = array<i32>} : memref<2x4xf32, #tpu.memory_space<vmem>>, vector<2x4xf32>,
      %c0_i32_18 = arith.constant 0 : i32
      %17 = arith.cmpi eq, %arg1, %c0_i32_18 : i32
      %18 = arith.extui %17 : i1 to i32
      %c0_i32_19 = arith.constant 0 : i32
      %19 = arith.cmpi ne, %18, %c0_i32_19 : i32
      scf.if %19 {
        %cst_29 = arith.constant 0.000000e+00 : f32
        %28 = vector.broadcast %cst_29 : f32 to vector<2x128xf32>
        %c0_30 = arith.constant 0 : index
        %c0_31 = arith.constant 0 : index
        %29 = vector.load %arg9[%c0_30, %c0_31] : memref<2x128xf32, #tpu.memory_space<vmem>>, vector<2x128xf32>
        tpu.vector_store %arg9[%c0_30, %c0_31], %28 {strides = array<i32>} : memref<2x128xf32, #tpu.memory_space<vmem>>, vector<2x128xf32>,
      } else {
      }
      %c0_20 = arith.constant 0 : index
      %c0_21 = arith.constant 0 : index
      %20 = vector.load %arg9[%c0_20, %c0_21] : memref<2x128xf32, #tpu.memory_space<vmem>>, vector<2x128xf32>
      %c0_22 = arith.constant 0 : index
      %c0_23 = arith.constant 0 : index
      %21 = vector.load %arg4[%c0_22, %c0_23] : memref<4x128xf32, #tpu.memory_space<vmem>>, vector<4x128xf32>
      %cst_24 = arith.constant dense<0.000000e+00> : vector<2x128xf32>
      %22 = tpu.matmul %15, %21, %cst_24 {dimension_numbers = #tpu.dot_dimension_numbers<[1], [0], [0], [1], [0, 0, 1, 1], [], []>} : vector<2x4xf32>, vector<4x128xf32>, vector<2x128xf32> -> vector<2x128xf32>
      %23 = arith.addf %20, %22 : vector<2x128xf32>
      %c0_25 = arith.constant 0 : index
      %c0_26 = arith.constant 0 : index
      %24 = vector.load %arg9[%c0_25, %c0_26] : memref<2x128xf32, #tpu.memory_space<vmem>>, vector<2x128xf32>
      tpu.vector_store %arg9[%c0_25, %c0_26], %23 {strides = array<i32>} : memref<2x128xf32, #tpu.memory_space<vmem>>, vector<2x128xf32>,
      %c0_i32_27 = arith.constant 0 : i32
      %25 = arith.cmpi eq, %arg1, %c0_i32_27 : i32
      %26 = arith.extui %25 : i1 to i32
      %c0_i32_28 = arith.constant 0 : i32
      %27 = arith.cmpi ne, %26, %c0_i32_28 : i32
      scf.if %27 {
        %c0_29 = arith.constant 0 : index
        %c0_30 = arith.constant 0 : index
        %28 = vector.load %arg9[%c0_29, %c0_30] : memref<2x128xf32, #tpu.memory_space<vmem>>, vector<2x128xf32>
        %c0_31 = arith.constant 0 : index
        %c0_32 = arith.constant 0 : index
        %29 = vector.load %arg5[%c0_31, %c0_32] : memref<1x128xf32, #tpu.memory_space<vmem>>, vector<1x128xf32>
        %30 = vector.broadcast %29 : vector<1x128xf32> to vector<2x128xf32>
        %31 = arith.addf %28, %30 : vector<2x128xf32>
        %c0_33 = arith.constant 0 : index
        %c0_34 = arith.constant 0 : index
        %32 = vector.load %arg7[%c0_33, %c0_34] : memref<2x128xf32, #tpu.memory_space<vmem>>, vector<2x128xf32>
        tpu.vector_store %arg7[%c0_33, %c0_34], %31 {strides = array<i32>} : memref<2x128xf32, #tpu.memory_space<vmem>>, vector<2x128xf32>,
      } else {
      }
    } else {
    }
    return
  }
  func.func @transform_0(%arg0: i32, %arg1: i32, %arg2: i32) -> (i32, i32, i32) {
    %c0_i32 = arith.constant 0 : i32
    return %arg0, %arg1, %arg2 : i32, i32, i32
  }
  func.func @transform_1(%arg0: i32, %arg1: i32, %arg2: i32) -> (i32, i32) {
    %c0_i32 = arith.constant 0 : i32
    %c0_i32_0 = arith.constant 0 : i32
    return %arg1, %c0_i32 : i32, i32
  }
  func.func @transform_2(%arg0: i32, %arg1: i32, %arg2: i32) -> (i32, i32) {
    %c0_i32 = arith.constant 0 : i32
    %c0_i32_0 = arith.constant 0 : i32
    %c0_i32_1 = arith.constant 0 : i32
    return %c0_i32, %c0_i32_0 : i32, i32
  }
  func.func @transform_3(%arg0: i32, %arg1: i32, %arg2: i32) -> (i32, i32) {
    %c0_i32 = arith.constant 0 : i32
    return %arg0, %arg1 : i32, i32
  }
  func.func @transform_4(%arg0: i32, %arg1: i32, %arg2: i32) -> (i32, i32) {
    %c0_i32 = arith.constant 0 : i32
    %c0_i32_0 = arith.constant 0 : i32
    return %arg0, %c0_i32 : i32, i32
  }
}

</mosaic_0001>

<bundles_post_ra>
// kernel: tpu_custom_call.1
= control target key start
LH: loop header
LB: loop body
LE: loop exit
PB: predicated region body
PF: predicated region fallthrough
CT: control target
= control target key end

     0   :  { %10 = vsyncpa [#allocation5], 0  ;;  %s546_s0 = inlined_call_operand.hbm [shape: f32[2,4,256], index: 0, kind: input, shape index: {}]   ;;  %s547_s1 = inlined_call_operand.hbm [shape: f32[4,128], index: 1, kind: input, shape index: {}]   ;;  %s548_s2 = inlined_call_operand.vmem [shape: f32[1,128], index: 2, kind: input, shape index: {}]   ;;  %s549_s3 = inlined_call_operand.hbm [shape: f32[2,4], index: 3, kind: output, shape index: {0}]   ;;  %s550_s4 = inlined_call_operand.hbm [shape: f32[2,128], index: 4, kind: output, shape index: {1}]  }
   0x1   :  { %11 = vsyncpa [#allocation8], 0 }
   0x2   :  { %12 = vsyncpa [#allocation6], 0 }
   0x3   :  { %13 = vsyncpa [#allocation11], 0  ;;  %s470_s15 = smov [#allocation4]  }
   0x4   :  { %s19_s16 = sshll.u32 %s470_s15, 4  ;;  %s20_s16 = int_to_ptr.vmem [resolvable:$true] %s19_s16 }
   0x5   :  { %s390_s17 = scalar_lea.vmem %s20_s16, 256  ;;  %p395_p1 = scmp.lt.s32.totalorder %s20_s16, %s20_s16 }
   0x6   :  { %p391_p0 = scmp.ne.s32.totalorder %s20_s16, %s390_s17  ;;  %p396_p2 = scmp.lt.s32.totalorder %s390_s17, %s390_s17 }
   0x8   :  { %p397_p3 = por %p396_p2, %p395_p1 }
   0xa   :  { %p398_p4 = pnand %p397_p3, %p391_p0 }
   0xc   :  { %401 = shalt.err (!%p398_p4)
}
   0xd   :  { %s471_s18 = smov 128   ;;  %s472_s19 = smov 8  }
   0xe   :  { %25 = dma.hbm_to_vmem [thread:$0]  %s546_s0, 256, %s20_s16, [#allocation5], %s471_s18, %s471_s18, %s472_s19  }
   0xf   :  { %s473_s22 = smov [#allocation7]  }
  0x10   :  { %s32_s23 = sshll.u32 %s473_s22, 4  ;;  %s33_s23 = int_to_ptr.vmem [resolvable:$true] %s32_s23 }
  0x11   :  { %s410_s24 = scalar_lea.vmem %s33_s23, 64  ;;  %p415_p6 = scmp.lt.s32.totalorder %s33_s23, %s33_s23 }
  0x12   :  { %p411_p5 = scmp.ne.s32.totalorder %s33_s23, %s410_s24  ;;  %p416_p7 = scmp.lt.s32.totalorder %s410_s24, %s410_s24 }
  0x14   :  { %p417_p8 = por %p416_p7, %p415_p6 }
  0x16   :  { %p418_p9 = pnand %p417_p8, %p411_p5 }
  0x18   :  { %421 = shalt.err (!%p418_p9)
}
  0x19   :  { %35 = dma.hbm_to_vmem [thread:$0]  %s547_s1, 64, %s33_s23, [#allocation8]  }
  0x1a   :  { %462 = dma.done.wait [#allocation5], 256  }
  0x1b   :  { %463 = vsyncadd [#allocation5], 4294967040 }
  0x1c   :  { %464 = dma.done.wait [#allocation8], 64  }
  0x1d   :  { %465 = vsyncadd [#allocation8], 4294967232  ;;  %v61_v0 = vlaneseq  ;;  %v474_v1 = vmov 0.0   ;;  %v475_v2 = vmov 1983009808   ;;  %v50_v12 = vld [vmem:[#allocation4] sm:$0xff] }
  0x1e   :  { %48 = vst [vmem:[#allocation2] sm:$0xf] %v474_v1  ;;  %v59_v3 = vunpack.c.l.s4 %v475_v2  ;;  %49 = vst [vmem:[#allocation2 + $0x4] sm:$0xf] %v474_v1  ;;  %367 = vmatprep.subr.mxu0 %v474_v1  ;;  %v476_v5 = vmov 1934713408  }
  0x1f   :  { %238 = vst [vmem:[#allocation3] sm:$0x3] %v474_v1  ;;  %v62_v4 = vshrl.u32 %v61_v0, 7  ;;  %v76_v6 = vunpack.c.l.s4 %v476_v5  ;;  %v221_v8 = vand.u32 127, %v61_v0  ;;  %v51_v13 = vld [vmem:[#allocation4 + $0x8] sm:$0xff]  ;;  %v56_v14 = vrot.slane %v50_v12, 4 }
  0x20   :  { %v60_v7 = vunpack.c.0.s8 %v59_v3  ;;  %v57_v16 = vrot.slane %v51_v13, 4  ;;  %vm124_vm0 = vcmask 1041408   ;;  %vm189_vm1 = vcmask 1041409   ;;  %s478_s0 = smov [#allocation9]  }
  0x21   :  { %v515_v10 = vsub.s32 %v221_v8, %v62_v4  ;;  %v77_v11 = vunpack.c.0.s8 %v76_v6  ;;  %vm191_vm2 = vcmask 1042434   ;;  %vm193_vm3 = vcmask 1043459   ;;  %s338_s1 = sshll.u32 %s478_s0, 4  ;;  %s339_s1 = int_to_ptr.vmem [resolvable:$true] %s338_s1 }
  0x22   :  { %v63_v9 = vsub.s32 %v60_v7, %v62_v4  ;;  %vm209_vm4 = vcmask 1043456   ;;  %vm477_vm5 = vmmov 0   ;;  %vm241_vm6 = vcmask 31744   ;;  %s422_s27 = scalar_lea.vmem %s339_s1, 32  ;;  %p427_p11 = scmp.lt.s32.totalorder %s339_s1, %s339_s1 }
  0x23   :  { %v80_v19 = vsub.s32 %v77_v11, %v62_v4  ;;  %369 = vmatprep.mubr.msk.f32.mxu0 %vm477_vm5, %v474_v1  ;;  %vm232_vm7 = vcmask 25600   ;;  %p423_p10 = scmp.ne.s32.totalorder %s339_s1, %s422_s27  ;;  %p428_p12 = scmp.lt.s32.totalorder %s422_s27, %s422_s27 }
  0x24   :  { %v64_v15 = vrot.slane %v50_v12, %v63_v9  ;;  %v97_v17 = vrot.slane %v51_v13, %v63_v9  ;;  %v72_v18 = vrot.slane %v56_v14, %v63_v9  ;;  %v105_v20 = vrot.slane %v57_v16, %v63_v9 }
  0x25   :  { %p429_p13 = por %p428_p12, %p427_p11 }
  0x26   :  { %v73_v21 = vcombine.low %v64_v15, %v72_v18  ;;  %v74_v22 = vcombine.high %v64_v15, %v72_v18  ;;  %v106_v23 = vcombine.low %v97_v17, %v105_v20  ;;  %v107_v24 = vcombine.high %v97_v17, %v105_v20 }
  0x27   :  { %p430_p0 = pnand %p429_p13, %p423_p10 }
  0x28   :  { %v81_v25 = vrot.slane %v73_v21, %v80_v19  ;;  %v88_v26 = vrot.slane %v74_v22, %v80_v19  ;;  %v114_v27 = vrot.slane %v106_v23, %v80_v19  ;;  %v121_v28 = vrot.slane %v107_v24, %v80_v19  ;;  %v52_v24 = vld [vmem:[#allocation2] sm:$0xf] }
  0x2a   :  { %v89_v29 = vcombine.high %v81_v25, %v474_v1  ;;  %v90_v30 = vcombine.high %v88_v26, %v474_v1  ;;  %v125_v31 = vsel %vm124_vm0, %v81_v25, 0.0  ;;  %v139_v32 = vsel %vm124_vm0, %v88_v26, 0.0 }
  0x2b   :  { %v126_v33 = vrot.slane %v125_v31, 4  ;;  %v140_v34 = vrot.slane %v139_v32, 4  ;;  %v122_v35 = vcombine.high %v114_v27, %v474_v1  ;;  %v123_v36 = vcombine.high %v121_v28, %v474_v1 }
  0x2c   :  { %v132_v37 = vsel %vm124_vm0, %v89_v29, 0.0  ;;  %v146_v38 = vsel %vm124_vm0, %v90_v30, 0.0  ;;  %v153_v39 = vsel %vm124_vm0, %v114_v27, 0.0  ;;  %v167_v40 = vsel %vm124_vm0, %v121_v28, 0.0 }
  0x2d   :  { %v127_v41 = vadd.f32 %v126_v33, %v125_v31  ;;  %v133_v42 = vrot.slane %v132_v37, 4  ;;  %v141_v43 = vadd.f32 %v140_v34, %v139_v32  ;;  %v147_v44 = vrot.slane %v146_v38, 4  ;;  %v53_v32 = vld [vmem:[#allocation2 + $0x4] sm:$0xf] }
  0x2e   :  { %v154_v45 = vrot.slane %v153_v39, 4  ;;  %v160_v46 = vsel %vm124_vm0, %v122_v35, 0.0  ;;  %v168_v47 = vrot.slane %v167_v40, 4  ;;  %v174_v48 = vsel %vm124_vm0, %v123_v36, 0.0 }
  0x2f   :  { %v128_v49 = vrot.slane %v127_v41, 2  ;;  %v134_v50 = vadd.f32 %v133_v42, %v132_v37  ;;  %v142_v51 = vrot.slane %v141_v43, 2  ;;  %v148_v52 = vadd.f32 %v147_v44, %v146_v38 }
  0x30   :  { %v155_v53 = vadd.f32 %v154_v45, %v153_v39  ;;  %v161_v54 = vrot.slane %v160_v46, 4  ;;  %v169_v55 = vadd.f32 %v168_v47, %v167_v40  ;;  %v175_v56 = vrot.slane %v174_v48, 4 }
  0x31   :  { %v129_v57 = vadd.f32 %v128_v49, %v127_v41  ;;  %v135_v58 = vrot.slane %v134_v50, 2  ;;  %v143_v59 = vadd.f32 %v142_v51, %v141_v43  ;;  %v149_v60 = vrot.slane %v148_v52, 2  ;;  %v240_v41 = vld [vmem:[#allocation7] sm:$0xf] }
  0x32   :  { %v156_v61 = vrot.slane %v155_v53, 2  ;;  %v162_v62 = vadd.f32 %v161_v54, %v160_v46  ;;  %v170_v63 = vrot.slane %v169_v55, 2  ;;  %v176_v0 = vadd.f32 %v175_v56, %v174_v48  ;;  %368 = vmatpush3.msk.msra.mxu0 %vm209_vm4, %v240_v41 }
  0x33   :  { %v130_v2 = vrot.slane %v129_v57, 1  ;;  %v136_v3 = vadd.f32 %v135_v58, %v134_v50  ;;  %v144_v4 = vrot.slane %v143_v59, 1  ;;  %v150_v5 = vadd.f32 %v149_v60, %v148_v52 }
  0x34   :  { %v157_v6 = vadd.f32 %v156_v61, %v155_v53  ;;  %v163_v7 = vrot.slane %v162_v62, 2  ;;  %v171_v8 = vadd.f32 %v170_v63, %v169_v55  ;;  %v177_v9 = vrot.slane %v176_v0, 2 }
  0x35   :  { %v131_v11 = vadd.f32 %v130_v2, %v129_v57  ;;  %v137_v12 = vrot.slane %v136_v3, 1  ;;  %v145_v13 = vadd.f32 %v144_v4, %v143_v59  ;;  %v151_v14 = vrot.slane %v150_v5, 1 }
  0x36   :  { %v158_v15 = vrot.slane %v157_v6, 1  ;;  %v164_v16 = vadd.f32 %v163_v7, %v162_v62  ;;  %v172_v17 = vrot.slane %v171_v8, 1  ;;  %v178_v18 = vadd.f32 %v177_v9, %v176_v0 }
  0x37   :  { %v138_v19 = vadd.f32 %v137_v12, %v136_v3  ;;  %v152_v20 = vadd.f32 %v151_v14, %v150_v5 }
  0x38   :  { %v159_v21 = vadd.f32 %v158_v15, %v157_v6  ;;  %v165_v22 = vrot.slane %v164_v16, 1  ;;  %v179_v23 = vrot.slane %v178_v18, 1  ;;  %v173_v26 = vadd.f32 %v172_v17, %v171_v8 }
  0x39   :  { %v190_v25 = vsel %vm189_vm1, %v138_v19, %v131_v11 }
  0x3a   :  { %v192_v27 = vsel %vm191_vm2, %v145_v13, %v190_v25  ;;  %v166_v28 = vadd.f32 %v165_v22, %v164_v16  ;;  %v180_v29 = vadd.f32 %v179_v23, %v178_v18 }
  0x3b   :  { %v194_v30 = vsel %vm193_vm3, %v152_v20, %v192_v27 }
  0x3c   :  { %v200_v31 = vadd.f32 %v194_v30, %v52_v24  ;;  %v195_v33 = vsel %vm189_vm1, %v166_v28, %v159_v21 }
  0x3d   :  { %v196_v34 = vsel %vm191_vm2, %v173_v26, %v195_v33 }
  0x3e   :  { %202 = vst [vmem:[#allocation2] sm:$0xf] %v200_v31  ;;  %v197_v35 = vsel %vm193_vm3, %v180_v29, %v196_v34 }
  0x3f   :  { %v201_v36 = vadd.f32 %v197_v35, %v53_v32 }
  0x41   :  { %203 = vst [vmem:[#allocation2 + $0x4] sm:$0xf] %v201_v36 }
  0x45   :  { %v207_v37 = vld [vmem:[#allocation2] sm:$0xf] }
  0x46   :  { %v210_v38 = vsel %vm209_vm4, %v207_v37, 0.0 }
  0x47   :  { %211 = vadd.xlane.f32.xlu0 %v210_v38 }
  0x48   :  { %v208_v39 = vld [vmem:[#allocation2 + $0x4] sm:$0xf] }
  0x49   :  { %v213_v40 = vsel %vm209_vm4, %v208_v39, 0.0 }
  0x4b   :  { %214 = vadd.xlane.f32.xlu0 %v213_v40 }
  0xd0   :  { %v212_v42 = vpop.xlane.xlu0 %211 }
  0xd1   :  { %v216_v43 = vmul.f32 0.00390625, %v212_v42 }
  0xd3   :  { %v225_v46 = vrot.slane %v216_v43, %v515_v10 }
  0xd4   :  { %v215_v44 = vpop.xlane.xlu0 %214 }
  0xd5   :  { %v217_v45 = vmul.f32 0.00390625, %v215_v44 }
  0xd7   :  { %v229_v47 = vrot.slane %v217_v45, %v515_v10 }
  0xd9   :  { %v230_v48 = vsel %vm189_vm1, %v229_v47, %v225_v46 }
  0xda   :  { %370 = vmatmul.mubr.msk.f32.vlgmr.msra.gmra.mxu0 %vm241_vm6, %v230_v48  ;;  %233 = vst.msk [vmem:[#allocation9] sm:$0x3] %vm232_vm7, %v230_v48 }
  0xdb   :  { %433 = shalt.err (!%p430_p0)
}
  0xdc   :  { %341 = dma.vmem_to_hbm [thread:$0]  %s339_s1, 32, %s549_s3, [#allocation6]   ;;  %v239_v1 = vld [vmem:[#allocation3] sm:$0x3]  ;;  %v364_v51 = vld [vmem:[%s548_s2] ss:$0 sm:$0xff] }
  0xdd   :  { %s479_s6 = smov [#allocation10]  }
  0xde   :  { %s348_s7 = sshll.u32 %s479_s6, 4  ;;  %s349_s7 = int_to_ptr.vmem [resolvable:$true] %s348_s7 }
  0xdf   :  { %s442_s8 = scalar_lea.vmem %s349_s7, 32  ;;  %p447_p2 = scmp.lt.s32.totalorder %s349_s7, %s349_s7 }
  0xe0   :  { %p443_p1 = scmp.ne.s32.totalorder %s349_s7, %s442_s8  ;;  %p448_p3 = scmp.lt.s32.totalorder %s442_s8, %s442_s8 }
  0xe2   :  { %p449_p4 = por %p448_p3, %p447_p2 }
  0xe4   :  { %p450_p5 = pnand %p449_p4, %p443_p1 }
 0x19a   :  { %v313_v10 = vpop.f32.mrf.mxu0 }
 0x19b   :  { %v317_v49 = vadd.f32 %v313_v10, %v239_v1 }
 0x19c   :  { %v371_v50 = vpop.f32.mrf.mxu0 }
 0x19d   :  { %318 = vst [vmem:[#allocation3] sm:$0x3] %v317_v49 }
 0x1a4   :  { %v322_v52 = vld [vmem:[#allocation3] sm:$0x3] }
 0x1a5   :  { %v330_v53 = vadd.f32 %v364_v51, %v322_v52 }
 0x1a7   :  { %331 = vst [vmem:[#allocation10] sm:$0x3] %v330_v53 }
 0x1a8   :  { %453 = shalt.err (!%p450_p5)
}
 0x1a9   :  { %351 = dma.vmem_to_hbm [thread:$0]  %s349_s7, 32, %s550_s4, [#allocation11]  }
 0x1aa   :  { %466 = dma.done.wait [#allocation6], 32  }
 0x1ab   :  { %467 = vsyncadd [#allocation6], 4294967264 }
 0x1ac   :  { %468 = dma.done.wait [#allocation11], 32  }
 0x1ad   :  { %469 = vsyncadd [#allocation11], 4294967264 }
 0x1ae   :  { %358 = vsyncpa [#allocation5], 1 }
 0x1af   :  { %359 = vsyncpa [#allocation8], 1 }
 0x1b0   :  { %360 = vsyncpa [#allocation6], 1 }
 0x1b1   :  { %361 = vsyncpa [#allocation11], 1 }

</bundles_post_ra>
